<compile_context>
chip_gen: v7x
topology: tpu7x:2x2x1
jax: 0.10.0
libtpu: 0.0.40
codegen_flags: <defaults>
</compile_context>

<pallas_src>
import functools

import jax
import jax.numpy as jnp
from jax.experimental import pallas as pl
from jax.experimental.pallas import tpu as pltpu


def _round_up(x, m):
    return (x + m - 1) // m * m


def _pick_tile_v(v_real, b_pad, c_pad, e_pad, budget_bytes=20 << 20):
    """Largest vocab tile (multiple of 128) whose double-buffered streamed
    tiles stay inside a conservative VMEM budget (safe for v7x's 64 MiB)."""
    v128 = max(128, _round_up(v_real, 128))
    tile = 128
    for cand in (128, 256, 512, 1024, 2048):
        if cand > v128:
            break
        # double-buffered: x_bow tile (f32) + wa tile (bf16) + ba tile (f32)
        # + two w1 tiles (bf16)
        per_step = 2 * cand * (4 * b_pad + 2 * c_pad + 4 + 4 * e_pad)
        if per_step <= budget_bytes:
            tile = cand
    return tile


def _contextual_encoder_kernel(
    x_ce_ref,    # [Bp, Cp]  f32   (resident)
    x_bow_ref,   # [Bp, Vt]  f32   (streamed over vocab tiles)
    wa_ref,      # [Cp, Vt]  bf16  (streamed)
    ba_ref,      # [1,  Vt]  f32   (streamed)
    w1b_ref,     # [Vt, Ep]  bf16  (streamed)
    w1c_ref,     # [Vt, Ep]  bf16  (streamed)
    gamma_ref,   # [1,  Ep]  f32   (resident)
    beta_ref,    # [1,  Ep]  f32   (resident)
    w2_ref,      # [Ep, Tp]  f32   (resident, tiny)
    b2_ref,      # [1,  Tp]  f32   (resident)
    out_ref,     # [Bp, Tp]  f32   (resident, written on last step)
    acc_ref,     # [Bp, Ep]  f32   scratch accumulator
    *, b_real, t_real, negative_slope, bn_eps,
):
    k = pl.program_id(0)
    nk = pl.num_programs(0)

    @pl.when(k == 0)
    def _():
        acc_ref[...] = jnp.zeros_like(acc_ref)

    # adapt_bert on this vocab tile: ce = x_ce @ Wa[:, tile] + ba[tile]
    ce = (jnp.dot(x_ce_ref[...].astype(jnp.bfloat16), wa_ref[...],
                  preferred_element_type=jnp.float32)
          + ba_ref[...])

    # concat([x_bow, ce]) @ W1 accumulated over vocab tiles:
    #   += x_bow_tile @ W1_bow_tile + ce_tile @ W1_ce_tile
    acc_ref[...] += (
        jnp.dot(x_bow_ref[...].astype(jnp.bfloat16), w1b_ref[...],
                preferred_element_type=jnp.float32)
        + jnp.dot(ce.astype(jnp.bfloat16), w1c_ref[...],
                  preferred_element_type=jnp.float32))

    @pl.when(k == nk - 1)
    def _():
        h = acc_ref[...]
        bp = h.shape[0]

        # BatchNorm1d (training mode): batch stats over the real rows only,
        # both reductions in one masked pass; normalize+affine folded into
        # a single scale/shift FMA.
        row_mask = (jax.lax.broadcasted_iota(jnp.int32, (bp, 1), 0)
                    < b_real).astype(jnp.float32)
        hm = h * row_mask
        inv_b = jnp.float32(1.0 / b_real)
        mean = jnp.sum(hm, axis=0, keepdims=True) * inv_b
        mean_sq = jnp.sum(hm * hm, axis=0, keepdims=True) * inv_b
        var = mean_sq - mean * mean
        scale = gamma_ref[...] * jax.lax.rsqrt(var + bn_eps)
        shift = beta_ref[...] - mean * scale
        hn = h * scale + shift

        # LeakyReLU
        hn = jnp.where(hn >= 0, hn, negative_slope * hn)

        # Linear(embedding_dim -> topic_num) + Softmax over real topic lanes.
        # Tiny epilogue matmul: keep it in f32 for accuracy.
        logits = (jnp.dot(hn, w2_ref[...], preferred_element_type=jnp.float32)
                  + b2_ref[...])
        col_ids = jax.lax.broadcasted_iota(jnp.int32, logits.shape, 1)
        logits = jnp.where(col_ids < t_real, logits, jnp.float32(-1e30))
        m = jnp.max(logits, axis=-1, keepdims=True)
        e = jnp.exp(logits - m)
        denom = jnp.sum(e, axis=-1, keepdims=True)
        # Exact divide so each row sums to 1 to f32 rounding (runs once on a
        # tiny [Bp, Tp] tile -> negligible cost).
        out_ref[...] = e / denom


def contextualized_encoder(x_bow, x_ce, params, *, negative_slope=0.1,
                           bn_eps=1e-5, tile_v=None):
    B, V = x_bow.shape
    C = x_ce.shape[1]
    E = params["w1_bow"].shape[1]
    T = params["w2"].shape[1]

    b_pad = _round_up(B, 8)
    c_pad = _round_up(C, 8)
    e_pad = _round_up(E, 128)
    t_pad = _round_up(T, 128)
    if tile_v is None:
        tile_v = _pick_tile_v(V, b_pad, c_pad, e_pad)
    v_pad = _round_up(max(V, tile_v), tile_v)

    f32, bf16 = jnp.float32, jnp.bfloat16

    def pad2(a, rows, cols, dtype):
        a = jnp.asarray(a, jnp.float32)
        a = jnp.pad(a, ((0, rows - a.shape[0]), (0, cols - a.shape[1])))
        return a.astype(dtype)

    # Zero-padding is semantics-preserving: padded vocab rows of W1 and padded
    # E / T columns are zero, padded topic lanes are masked pre-softmax, and
    # BN stats are masked to the real batch rows inside the kernel.
    x_ce_p = pad2(x_ce, b_pad, c_pad, f32)
    x_bow_p = pad2(x_bow, b_pad, v_pad, f32)
    wa_p = pad2(params["wa"], c_pad, v_pad, bf16)
    ba_p = pad2(params["ba"], 1, v_pad, f32)
    w1b_p = pad2(params["w1_bow"], v_pad, e_pad, bf16)
    w1c_p = pad2(params["w1_ce"], v_pad, e_pad, bf16)
    gamma_p = pad2(params["gamma"], 1, e_pad, f32)
    beta_p = pad2(params["beta"], 1, e_pad, f32)
    w2_p = pad2(params["w2"], e_pad, t_pad, f32)
    b2_p = pad2(params["b2"], 1, t_pad, f32)

    grid = (v_pad // tile_v,)

    # Advisory cost estimate (real, unpadded work).
    flops = 2 * B * (C * V + 2 * V * E + E * T)
    bytes_accessed = int(sum(a.size * a.dtype.itemsize for a in (
        x_ce_p, x_bow_p, wa_p, ba_p, w1b_p, w1c_p, gamma_p, beta_p, w2_p, b2_p))
        + b_pad * t_pad * 4)
    cost = pl.CostEstimate(flops=flops, transcendentals=B * T,
                           bytes_accessed=bytes_accessed)

    # VMEM budget: double-buffered streamed tiles + resident operands + margin,
    # capped well below v7x's 64 MiB physical VMEM.
    streamed = 2 * tile_v * (4 * b_pad + 2 * c_pad + 4 + 4 * e_pad)
    resident = (2 * b_pad * c_pad * 4 + 4 * e_pad * 4 + 2 * e_pad * t_pad * 4
                + 2 * t_pad * 4 + 2 * b_pad * t_pad * 4 + b_pad * e_pad * 4)
    vmem_limit = int(min(max(streamed + resident + (8 << 20), 16 << 20), 56 << 20))

    kernel = functools.partial(
        _contextual_encoder_kernel,
        b_real=B, t_real=T,
        negative_slope=float(negative_slope), bn_eps=float(bn_eps))

    out_padded = pl.pallas_call(
        kernel,
        out_shape=jax.ShapeDtypeStruct((b_pad, t_pad), jnp.float32),
        grid_spec=pltpu.PrefetchScalarGridSpec(
            num_scalar_prefetch=0,
            grid=grid,
            in_specs=[
                pl.BlockSpec((b_pad, c_pad), lambda k: (0, 0)),    # x_ce (resident)
                pl.BlockSpec((b_pad, tile_v), lambda k: (0, k)),   # x_bow tile
                pl.BlockSpec((c_pad, tile_v), lambda k: (0, k)),   # wa tile
                pl.BlockSpec((1, tile_v), lambda k: (0, k)),       # ba tile
                pl.BlockSpec((tile_v, e_pad), lambda k: (k, 0)),   # w1_bow tile
                pl.BlockSpec((tile_v, e_pad), lambda k: (k, 0)),   # w1_ce tile
                pl.BlockSpec((1, e_pad), lambda k: (0, 0)),        # gamma
                pl.BlockSpec((1, e_pad), lambda k: (0, 0)),        # beta
                pl.BlockSpec((e_pad, t_pad), lambda k: (0, 0)),    # w2
                pl.BlockSpec((1, t_pad), lambda k: (0, 0)),        # b2
            ],
            out_specs=pl.BlockSpec((b_pad, t_pad), lambda k: (0, 0)),
            scratch_shapes=[pltpu.VMEM((b_pad, e_pad), jnp.float32)],
        ),
        compiler_params=pltpu.CompilerParams(
            dimension_semantics=("arbitrary",),
            vmem_limit_bytes=vmem_limit),
        cost_estimate=cost,
    )(x_ce_p, x_bow_p, wa_p, ba_p, w1b_p, w1c_p, gamma_p, beta_p, w2_p, b2_p)

    return out_padded[:B, :T]


def init_params(key, *, topic_num, embedding_dim, vocab_size, contextual_dim):
    """Deterministic synthetic parameters (shapes match the PyTorch module)."""
    ks = jax.random.split(key, 5)
    scale = 0.05
    wa = scale * jax.random.normal(ks[0], (contextual_dim, vocab_size), jnp.float32)
    ba = scale * jax.random.normal(ks[1], (1, vocab_size), jnp.float32)
    w1 = scale * jax.random.normal(ks[2], (2 * vocab_size, embedding_dim), jnp.float32)
    gamma = jnp.ones((1, embedding_dim), jnp.float32)
    beta = jnp.zeros((1, embedding_dim), jnp.float32)
    w2 = scale * jax.random.normal(ks[3], (embedding_dim, topic_num), jnp.float32)
    b2 = scale * jax.random.normal(ks[4], (1, topic_num), jnp.float32)
    return {
        "wa": wa, "ba": ba,
        "w1_bow": w1[:vocab_size], "w1_ce": w1[vocab_size:],
        "gamma": gamma, "beta": beta,
        "w2": w2, "b2": b2,
    }


def reference_forward(x_bow, x_ce, p, *, negative_slope=0.1, bn_eps=1e-5):
    ce = x_ce @ p["wa"] + p["ba"]
    h = x_bow @ p["w1_bow"] + ce @ p["w1_ce"]
    mean = jnp.mean(h, axis=0, keepdims=True)
    var = jnp.mean((h - mean) ** 2, axis=0, keepdims=True)
    h = (h - mean) / jnp.sqrt(var + bn_eps) * p["gamma"] + p["beta"]
    h = jnp.where(h >= 0, h, negative_slope * h)
    logits = h @ p["w2"] + p["b2"]
    return jax.nn.softmax(logits, axis=1)


def _run_case(batch, topic_num, embedding_dim, vocab_size, contextual_dim, seed):
    key = jax.random.PRNGKey(seed)
    k_bow, k_ce, k_params = jax.random.split(key, 3)
    x_bow = jax.random.uniform(k_bow, (batch, vocab_size), jnp.float32)
    x_ce = jax.random.normal(k_ce, (batch, contextual_dim), jnp.float32)
    params = init_params(k_params, topic_num=topic_num,
                         embedding_dim=embedding_dim, vocab_size=vocab_size,
                         contextual_dim=contextual_dim)

    out = jax.block_until_ready(contextualized_encoder(x_bow, x_ce, params))
    ref = reference_forward(x_bow, x_ce, params)

    assert out.shape == (batch, topic_num)
    assert bool(jnp.all(jnp.isfinite(out)))
    # Exact softmax division -> rows sum to 1 to f32 rounding.
    assert jnp.allclose(jnp.sum(out, axis=1), 1.0, atol=1e-3)
    # bf16 weight streaming -> loosened tolerances vs the pure f32 reference.
    assert jnp.allclose(out, ref, atol=1e-2, rtol=1e-2)


if __name__ == "__main__":
    # Small, module-consistent shapes (single vocab tile).
    _run_case(batch=8, topic_num=8, embedding_dim=32,
              vocab_size=32, contextual_dim=16, seed=0)
    # Exercise multi-tile vocab grid + batch/topic/embedding padding paths.
    _run_case(batch=5, topic_num=20, embedding_dim=48,
              vocab_size=300, contextual_dim=24, seed=0)
    print("KERNEL_OK")
</pallas_src>

<mosaic_0001>
module attributes {stable_mosaic.version = 11 : i64} {
  func.func @_contextual_encoder_kernel(%arg0: i32, %arg1: memref<8x16xf32, #tpu.memory_space<vmem>>, %arg2: memref<8x128xf32, #tpu.memory_space<vmem>>, %arg3: memref<16x128xbf16, #tpu.memory_space<vmem>>, %arg4: memref<1x128xf32, #tpu.memory_space<vmem>>, %arg5: memref<128x128xbf16, #tpu.memory_space<vmem>>, %arg6: memref<128x128xbf16, #tpu.memory_space<vmem>>, %arg7: memref<1x128xf32, #tpu.memory_space<vmem>>, %arg8: memref<1x128xf32, #tpu.memory_space<vmem>>, %arg9: memref<128x128xf32, #tpu.memory_space<vmem>>, %arg10: memref<1x128xf32, #tpu.memory_space<vmem>>, %arg11: memref<8x128xf32, #tpu.memory_space<vmem>>, %arg12: memref<8x128xf32, #tpu.memory_space<vmem>>) attributes {dimension_semantics = [#tpu.dimension_semantics<arbitrary>], iteration_bounds = array<i64: 1>, scalar_prefetch = 0 : i64, scratch_operands = 1 : i64, tpu.core_type = #tpu.core_type<tc>, window_params = [{pipeline_mode = #tpu.pipeline_mode<synchronous>, transform_indices = @transform_0, window_bounds = array<i64: 8, 16>}, {transform_indices = @transform_1, window_bounds = array<i64: 8, 128>}, {transform_indices = @transform_2, window_bounds = array<i64: 16, 128>}, {transform_indices = @transform_3, window_bounds = array<i64: 1, 128>}, {transform_indices = @transform_4, window_bounds = array<i64: 128, 128>}, {transform_indices = @transform_5, window_bounds = array<i64: 128, 128>}, {pipeline_mode = #tpu.pipeline_mode<synchronous>, transform_indices = @transform_6, window_bounds = array<i64: 1, 128>}, {pipeline_mode = #tpu.pipeline_mode<synchronous>, transform_indices = @transform_7, window_bounds = array<i64: 1, 128>}, {pipeline_mode = #tpu.pipeline_mode<synchronous>, transform_indices = @transform_8, window_bounds = array<i64: 128, 128>}, {pipeline_mode = #tpu.pipeline_mode<synchronous>, transform_indices = @transform_9, window_bounds = array<i64: 1, 128>}, {pipeline_mode = #tpu.pipeline_mode<synchronous>, transform_indices = @transform_10, window_bounds = array<i64: 8, 128>}]} {
    %c0_i32 = arith.constant 0 : i32
    %0 = arith.cmpi eq, %arg0, %c0_i32 : i32
    %1 = arith.extui %0 : i1 to i32
    %c0_i32_0 = arith.constant 0 : i32
    %2 = arith.cmpi ne, %1, %c0_i32_0 : i32
    scf.if %2 {
      %cst_20 = arith.constant 0.000000e+00 : f32
      %24 = vector.broadcast %cst_20 : f32 to vector<8x128xf32>
      %c0_21 = arith.constant 0 : index
      %c0_22 = arith.constant 0 : index
      %25 = vector.load %arg12[%c0_21, %c0_22] : memref<8x128xf32, #tpu.memory_space<vmem>>, vector<8x128xf32>
      tpu.vector_store %arg12[%c0_21, %c0_22], %24 {strides = array<i32>} : memref<8x128xf32, #tpu.memory_space<vmem>>, vector<8x128xf32>,
    } else {
    }
    %c0 = arith.constant 0 : index
    %c0_1 = arith.constant 0 : index
    %3 = vector.load %arg1[%c0, %c0_1] : memref<8x16xf32, #tpu.memory_space<vmem>>, vector<8x16xf32>
    %4 = arith.truncf %3 : vector<8x16xf32> to vector<8x16xbf16>
    %c0_2 = arith.constant 0 : index
    %c0_3 = arith.constant 0 : index
    %5 = vector.load %arg3[%c0_2, %c0_3] : memref<16x128xbf16, #tpu.memory_space<vmem>>, vector<16x128xbf16>
    %cst = arith.constant dense<0.000000e+00> : vector<8x128xf32>
    %6 = tpu.matmul %4, %5, %cst {dimension_numbers = #tpu.dot_dimension_numbers<[1], [0], [0], [1], [0, 0, 1, 1], [], []>} : vector<8x16xbf16>, vector<16x128xbf16>, vector<8x128xf32> -> vector<8x128xf32>
    %c0_4 = arith.constant 0 : index
    %c0_5 = arith.constant 0 : index
    %7 = vector.load %arg4[%c0_4, %c0_5] : memref<1x128xf32, #tpu.memory_space<vmem>>, vector<1x128xf32>
    %8 = vector.broadcast %7 : vector<1x128xf32> to vector<8x128xf32>
    %9 = arith.addf %6, %8 : vector<8x128xf32>
    %c0_6 = arith.constant 0 : index
    %c0_7 = arith.constant 0 : index
    %10 = vector.load %arg12[%c0_6, %c0_7] : memref<8x128xf32, #tpu.memory_space<vmem>>, vector<8x128xf32>
    %c0_8 = arith.constant 0 : index
    %c0_9 = arith.constant 0 : index
    %11 = vector.load %arg2[%c0_8, %c0_9] : memref<8x128xf32, #tpu.memory_space<vmem>>, vector<8x128xf32>
    %12 = arith.truncf %11 : vector<8x128xf32> to vector<8x128xbf16>
    %c0_10 = arith.constant 0 : index
    %c0_11 = arith.constant 0 : index
    %13 = vector.load %arg5[%c0_10, %c0_11] : memref<128x128xbf16, #tpu.memory_space<vmem>>, vector<128x128xbf16>
    %cst_12 = arith.constant dense<0.000000e+00> : vector<8x128xf32>
    %14 = tpu.matmul %12, %13, %cst_12 {dimension_numbers = #tpu.dot_dimension_numbers<[1], [0], [0], [1], [0, 0, 1, 1], [], []>} : vector<8x128xbf16>, vector<128x128xbf16>, vector<8x128xf32> -> vector<8x128xf32>
    %15 = arith.truncf %9 : vector<8x128xf32> to vector<8x128xbf16>
    %c0_13 = arith.constant 0 : index
    %c0_14 = arith.constant 0 : index
    %16 = vector.load %arg6[%c0_13, %c0_14] : memref<128x128xbf16, #tpu.memory_space<vmem>>, vector<128x128xbf16>
    %cst_15 = arith.constant dense<0.000000e+00> : vector<8x128xf32>
    %17 = tpu.matmul %15, %16, %cst_15 {dimension_numbers = #tpu.dot_dimension_numbers<[1], [0], [0], [1], [0, 0, 1, 1], [], []>} : vector<8x128xbf16>, vector<128x128xbf16>, vector<8x128xf32> -> vector<8x128xf32>
    %18 = arith.addf %14, %17 : vector<8x128xf32>
    %19 = arith.addf %10, %18 : vector<8x128xf32>
    %c0_16 = arith.constant 0 : index
    %c0_17 = arith.constant 0 : index
    %20 = vector.load %arg12[%c0_16, %c0_17] : memref<8x128xf32, #tpu.memory_space<vmem>>, vector<8x128xf32>
    tpu.vector_store %arg12[%c0_16, %c0_17], %19 {strides = array<i32>} : memref<8x128xf32, #tpu.memory_space<vmem>>, vector<8x128xf32>,
    %c0_i32_18 = arith.constant 0 : i32
    %21 = arith.cmpi eq, %arg0, %c0_i32_18 : i32
    %22 = arith.extui %21 : i1 to i32
    %c0_i32_19 = arith.constant 0 : i32
    %23 = arith.cmpi ne, %22, %c0_i32_19 : i32
    scf.if %23 {
      %c0_20 = arith.constant 0 : index
      %c0_21 = arith.constant 0 : index
      %24 = vector.load %arg12[%c0_20, %c0_21] : memref<8x128xf32, #tpu.memory_space<vmem>>, vector<8x128xf32>
      %25 = tpu.iota {dimensions = array<i32: 0>} : vector<8x1xi32>
      %c8_i32 = arith.constant 8 : i32
      %26 = vector.broadcast %c8_i32 : i32 to vector<8x1xi32>
      %27 = arith.cmpi slt, %25, %26 : vector<8x1xi32>
      %28 = arith.extui %27 : vector<8x1xi1> to vector<8x1xi32>
      %29 = arith.sitofp %28 : vector<8x1xi32> to vector<8x1xf32>
      %30 = vector.broadcast %29 : vector<8x1xf32> to vector<8x128xf32>
      %31 = arith.mulf %24, %30 : vector<8x128xf32>
      %cst_22 = arith.constant dense<0.000000e+00> : vector<128xf32>
      %32 = vector.multi_reduction <add>, %31, %cst_22 [0] : vector<8x128xf32> to vector<128xf32>
      %33 = vector.shape_cast %32 : vector<128xf32> to vector<1x128xf32>
      %cst_23 = arith.constant 1.250000e-01 : f32
      %34 = vector.broadcast %cst_23 : f32 to vector<1x128xf32>
      %35 = arith.mulf %33, %34 : vector<1x128xf32>
      %36 = arith.mulf %31, %31 : vector<8x128xf32>
      %cst_24 = arith.constant dense<0.000000e+00> : vector<128xf32>
      %37 = vector.multi_reduction <add>, %36, %cst_24 [0] : vector<8x128xf32> to vector<128xf32>
      %38 = vector.shape_cast %37 : vector<128xf32> to vector<1x128xf32>
      %cst_25 = arith.constant 1.250000e-01 : f32
      %39 = vector.broadcast %cst_25 : f32 to vector<1x128xf32>
      %40 = arith.mulf %38, %39 : vector<1x128xf32>
      %41 = arith.mulf %35, %35 : vector<1x128xf32>
      %42 = arith.subf %40, %41 : vector<1x128xf32>
      %c0_26 = arith.constant 0 : index
      %c0_27 = arith.constant 0 : index
      %43 = vector.load %arg7[%c0_26, %c0_27] : memref<1x128xf32, #tpu.memory_space<vmem>>, vector<1x128xf32>
      %cst_28 = arith.constant 9.99999974E-6 : f32
      %44 = vector.broadcast %cst_28 : f32 to vector<1x128xf32>
      %45 = arith.addf %42, %44 : vector<1x128xf32>
      %46 = math.rsqrt %45 : vector<1x128xf32>
      %47 = arith.mulf %43, %46 : vector<1x128xf32>
      %c0_29 = arith.constant 0 : index
      %c0_30 = arith.constant 0 : index
      %48 = vector.load %arg8[%c0_29, %c0_30] : memref<1x128xf32, #tpu.memory_space<vmem>>, vector<1x128xf32>
      %49 = arith.mulf %35, %47 : vector<1x128xf32>
      %50 = arith.subf %48, %49 : vector<1x128xf32>
      %51 = vector.broadcast %47 : vector<1x128xf32> to vector<8x128xf32>
      %52 = arith.mulf %24, %51 : vector<8x128xf32>
      %53 = vector.broadcast %50 : vector<1x128xf32> to vector<8x128xf32>
      %54 = arith.addf %52, %53 : vector<8x128xf32>
      %cst_31 = arith.constant 0.000000e+00 : f32
      %55 = vector.broadcast %cst_31 : f32 to vector<8x128xf32>
      %56 = arith.cmpf oge, %54, %55 : vector<8x128xf32>
      %cst_32 = arith.constant 1.000000e-01 : f32
      %57 = vector.broadcast %cst_32 : f32 to vector<8x128xf32>
      %58 = arith.mulf %57, %54 : vector<8x128xf32>
      %59 = arith.select %56, %54, %58 : vector<8x128xi1>, vector<8x128xf32>
      %c0_33 = arith.constant 0 : index
      %c0_34 = arith.constant 0 : index
      %60 = vector.load %arg9[%c0_33, %c0_34] : memref<128x128xf32, #tpu.memory_space<vmem>>, vector<128x128xf32>
      %cst_35 = arith.constant dense<0.000000e+00> : vector<8x128xf32>
      %61 = tpu.matmul %59, %60, %cst_35 {dimension_numbers = #tpu.dot_dimension_numbers<[1], [0], [0], [1], [0, 0, 1, 1], [], []>} : vector<8x128xf32>, vector<128x128xf32>, vector<8x128xf32> -> vector<8x128xf32>
      %c0_36 = arith.constant 0 : index
      %c0_37 = arith.constant 0 : index
      %62 = vector.load %arg10[%c0_36, %c0_37] : memref<1x128xf32, #tpu.memory_space<vmem>>, vector<1x128xf32>
      %63 = vector.broadcast %62 : vector<1x128xf32> to vector<8x128xf32>
      %64 = arith.addf %61, %63 : vector<8x128xf32>
      %65 = tpu.iota {dimensions = array<i32: 1>} : vector<8x128xi32>
      %c8_i32_38 = arith.constant 8 : i32
      %66 = vector.broadcast %c8_i32_38 : i32 to vector<8x128xi32>
      %67 = arith.cmpi slt, %65, %66 : vector<8x128xi32>
      %cst_39 = arith.constant -1.000000e+30 : f32
      %68 = vector.broadcast %cst_39 : f32 to vector<8x128xf32>
      %69 = arith.select %67, %64, %68 : vector<8x128xi1>, vector<8x128xf32>
      %cst_40 = arith.constant dense<0xFF800000> : vector<8xf32>
      %70 = vector.multi_reduction <maximumf>, %69, %cst_40 [1] : vector<8x128xf32> to vector<8xf32>
      %71 = vector.shape_cast %70 : vector<8xf32> to vector<8x1xf32>
      %72 = vector.broadcast %71 : vector<8x1xf32> to vector<8x128xf32>
      %73 = arith.subf %69, %72 : vector<8x128xf32>
      %74 = math.exp %73 : vector<8x128xf32>
      %cst_41 = arith.constant dense<0.000000e+00> : vector<8xf32>
      %75 = vector.multi_reduction <add>, %74, %cst_41 [1] : vector<8x128xf32> to vector<8xf32>
      %76 = vector.shape_cast %75 : vector<8xf32> to vector<8x1xf32>
      %77 = vector.broadcast %76 : vector<8x1xf32> to vector<8x128xf32>
      %78 = arith.divf %74, %77 : vector<8x128xf32>
      %c0_42 = arith.constant 0 : index
      %c0_43 = arith.constant 0 : index
      %79 = vector.load %arg11[%c0_42, %c0_43] : memref<8x128xf32, #tpu.memory_space<vmem>>, vector<8x128xf32>
      tpu.vector_store %arg11[%c0_42, %c0_43], %78 {strides = array<i32>} : memref<8x128xf32, #tpu.memory_space<vmem>>, vector<8x128xf32>,
    } else {
    }
    return
  }
  func.func @transform_0(%arg0: i32) -> (i32, i32) {
    %c0_i32 = arith.constant 0 : i32
    %c0_i32_0 = arith.constant 0 : i32
    %c0_i32_1 = arith.constant 0 : i32
    return %c0_i32, %c0_i32_0 : i32, i32
  }
  func.func @transform_1(%arg0: i32) -> (i32, i32) {
    %c0_i32 = arith.constant 0 : i32
    %c0_i32_0 = arith.constant 0 : i32
    return %c0_i32, %arg0 : i32, i32
  }
  func.func @transform_2(%arg0: i32) -> (i32, i32) {
    %c0_i32 = arith.constant 0 : i32
    %c0_i32_0 = arith.constant 0 : i32
    return %c0_i32, %arg0 : i32, i32
  }
  func.func @transform_3(%arg0: i32) -> (i32, i32) {
    %c0_i32 = arith.constant 0 : i32
    %c0_i32_0 = arith.constant 0 : i32
    return %c0_i32, %arg0 : i32, i32
  }
  func.func @transform_4(%arg0: i32) -> (i32, i32) {
    %c0_i32 = arith.constant 0 : i32
    %c0_i32_0 = arith.constant 0 : i32
    return %arg0, %c0_i32 : i32, i32
  }
  func.func @transform_5(%arg0: i32) -> (i32, i32) {
    %c0_i32 = arith.constant 0 : i32
    %c0_i32_0 = arith.constant 0 : i32
    return %arg0, %c0_i32 : i32, i32
  }
  func.func @transform_6(%arg0: i32) -> (i32, i32) {
    %c0_i32 = arith.constant 0 : i32
    %c0_i32_0 = arith.constant 0 : i32
    %c0_i32_1 = arith.constant 0 : i32
    return %c0_i32, %c0_i32_0 : i32, i32
  }
  func.func @transform_7(%arg0: i32) -> (i32, i32) {
    %c0_i32 = arith.constant 0 : i32
    %c0_i32_0 = arith.constant 0 : i32
    %c0_i32_1 = arith.constant 0 : i32
    return %c0_i32, %c0_i32_0 : i32, i32
  }
  func.func @transform_8(%arg0: i32) -> (i32, i32) {
    %c0_i32 = arith.constant 0 : i32
    %c0_i32_0 = arith.constant 0 : i32
    %c0_i32_1 = arith.constant 0 : i32
    return %c0_i32, %c0_i32_0 : i32, i32
  }
  func.func @transform_9(%arg0: i32) -> (i32, i32) {
    %c0_i32 = arith.constant 0 : i32
    %c0_i32_0 = arith.constant 0 : i32
    %c0_i32_1 = arith.constant 0 : i32
    return %c0_i32, %c0_i32_0 : i32, i32
  }
  func.func @transform_10(%arg0: i32) -> (i32, i32) {
    %c0_i32 = arith.constant 0 : i32
    %c0_i32_0 = arith.constant 0 : i32
    %c0_i32_1 = arith.constant 0 : i32
    return %c0_i32, %c0_i32_0 : i32, i32
  }
}

</mosaic_0001>

<bundles_post_ra>
// kernel: tpu_custom_call.1
= control target key start
LH: loop header
LB: loop body
LE: loop exit
PB: predicated region body
PF: predicated region fallthrough
CT: control target
= control target key end

     0   :  { %15 = vsyncpa [#allocation4], 0  ;;  %s1137_s0 = inlined_call_operand.hbm [shape: f32[8,16], index: 0, kind: input, shape index: {}]   ;;  %s1138_s1 = inlined_call_operand.hbm [shape: f32[8,128], index: 1, kind: input, shape index: {}]   ;;  %s1139_s2 = inlined_call_operand.hbm [shape: bf16[16,128], index: 2, kind: input, shape index: {}]   ;;  %s1140_s3 = inlined_call_operand.vmem [shape: f32[1,128], index: 3, kind: input, shape index: {}]   ;;  %s1141_s4 = inlined_call_operand.hbm [shape: bf16[128,128], index: 4, kind: input, shape index: {}]   ;;  %s1142_s5 = inlined_call_operand.hbm [shape: bf16[128,128], index: 5, kind: input, shape index: {}]   ;;  %s1143_s6 = inlined_call_operand.vmem [shape: f32[1,128], index: 6, kind: input, shape index: {}]   ;;  %s1144_s7 = inlined_call_operand.vmem [shape: f32[1,128], index: 7, kind: input, shape index: {}]   ;;  %s1145_s8 = inlined_call_operand.hbm [shape: f32[128,128], index: 8, kind: input, shape index: {}]   ;;  %s1146_s9 = inlined_call_operand.vmem [shape: f32[1,128], index: 9, kind: input, shape index: {}]   ;;  %s1147_s10 = inlined_call_operand.hbm [shape: f32[8,128], index: 10, kind: output, shape index: {}]  }
   0x1   :  { %16 = vsyncpa [#allocation7], 0 }
   0x2   :  { %17 = vsyncpa [#allocation10], 0 }
   0x3   :  { %18 = vsyncpa [#allocation13], 0 }
   0x4   :  { %19 = vsyncpa [#allocation5], 0  ;;  %s938_s13 = smov [#allocation6]   ;;  %s774_s17 = scalar_lea.hbm %s1138_s1, 128 }
   0x5   :  { %s36_s14 = sshll.u32 %s938_s13, 4  ;;  %p775_p0 = scmp.ne.s32.totalorder %s1138_s1, %s774_s17  ;;  %s37_s14 = int_to_ptr.vmem [resolvable:$true] %s36_s14 }
   0x6   :  { %p778_p1 = scmp.lt.u32.totalorder %s774_s17, %s1138_s1 }
   0x8   :  { %p780_p2 = pnand %p778_p1, %p775_p0 }
   0xa   :  { %783 = shalt.err (!%p780_p2)
}
   0xb   :  { %s784_s22 = scalar_lea.vmem %s37_s14, 128  ;;  %p789_p4 = scmp.lt.s32.totalorder %s37_s14, %s37_s14 }
   0xc   :  { %p785_p3 = scmp.ne.s32.totalorder %s37_s14, %s784_s22  ;;  %p790_p5 = scmp.lt.s32.totalorder %s784_s22, %s784_s22 }
   0xe   :  { %p791_p6 = por %p790_p5, %p789_p4 }
  0x10   :  { %p792_p7 = pnand %p791_p6, %p785_p3 }
  0x12   :  { %795 = shalt.err (!%p792_p7)
}
  0x13   :  { %39 = dma.hbm_to_vmem [thread:$0]  %s1138_s1, 128, %s37_s14, [#allocation7]  }
  0x14   :  { %s939_s25 = smov [#allocation9]   ;;  %s940_s27 = smov [#allocation3]  }
  0x15   :  { %s59_s26 = sshll.u32 %s939_s25, 4  ;;  %s26_s28 = sshll.u32 %s940_s27, 4  ;;  %s60_s26 = int_to_ptr.vmem [resolvable:$true] %s59_s26  ;;  %s27_s28 = int_to_ptr.vmem [resolvable:$true] %s26_s28 }
  0x16   :  { %s796_s11 = scalar_lea.hbm %s1141_s4, 1024 }
  0x17   :  { %p797_p8 = scmp.ne.s32.totalorder %s1141_s4, %s796_s11  ;;  %p800_p9 = scmp.lt.u32.totalorder %s796_s11, %s1141_s4 }
  0x19   :  { %p802_p10 = pnand %p800_p9, %p797_p8 }
  0x1b   :  { %805 = shalt.err (!%p802_p10)
}
  0x1c   :  { %s806_s1 = scalar_lea.vmem %s60_s26, 1024  ;;  %p811_p12 = scmp.lt.s32.totalorder %s60_s26, %s60_s26 }
  0x1d   :  { %p807_p11 = scmp.ne.s32.totalorder %s60_s26, %s806_s1  ;;  %p812_p13 = scmp.lt.s32.totalorder %s806_s1, %s806_s1 }
  0x1f   :  { %p813_p0 = por %p812_p13, %p811_p12 }
  0x21   :  { %p814_p1 = pnand %p813_p0, %p807_p11 }
  0x23   :  { %817 = shalt.err (!%p814_p1)
}
  0x24   :  { %s941_s14 = smov 64   ;;  %s942_s17 = smov 4  }
  0x25   :  { %65 = dma.hbm_to_vmem [thread:$0]  %s1141_s4, 1024, %s60_s26, [#allocation10], %s941_s14, %s941_s14, %s942_s17  }
  0x26   :  { %s818_s22 = scalar_lea.hbm %s1137_s0, 128 }
  0x27   :  { %p819_p2 = scmp.ne.s32.totalorder %s1137_s0, %s818_s22  ;;  %p822_p3 = scmp.lt.u32.totalorder %s818_s22, %s1137_s0 }
  0x29   :  { %p824_p4 = pnand %p822_p3, %p819_p2 }
  0x2b   :  { %827 = shalt.err (!%p824_p4)
}
  0x2c   :  { %s828_s29 = scalar_lea.vmem %s27_s28, 128  ;;  %p833_p6 = scmp.lt.s32.totalorder %s27_s28, %s27_s28 }
  0x2d   :  { %p829_p5 = scmp.ne.s32.totalorder %s27_s28, %s828_s29  ;;  %p834_p7 = scmp.lt.s32.totalorder %s828_s29, %s828_s29 }
  0x2f   :  { %p835_p8 = por %p834_p7, %p833_p6 }
  0x31   :  { %p836_p9 = pnand %p835_p8, %p829_p5 }
  0x33   :  { %839 = shalt.err (!%p836_p9)
}
  0x34   :  { %29 = dma.hbm_to_vmem [thread:$0]  %s1137_s0, 128, %s27_s28, [#allocation4]  }
  0x35   :  { %s943_s30 = smov [#allocation8]   ;;  %s944_s12 = smov [#allocation11]  }
  0x36   :  { %s45_s11 = sshll.u32 %s943_s30, 4  ;;  %s71_s13 = sshll.u32 %s944_s12, 4  ;;  %s46_s11 = int_to_ptr.vmem [resolvable:$true] %s45_s11  ;;  %s72_s13 = int_to_ptr.vmem [resolvable:$true] %s71_s13 }
  0x37   :  { %s840_s1 = scalar_lea.hbm %s1139_s2, 128 }
  0x38   :  { %p841_p10 = scmp.ne.s32.totalorder %s1139_s2, %s840_s1  ;;  %p844_p11 = scmp.lt.u32.totalorder %s840_s1, %s1139_s2 }
  0x3a   :  { %p846_p12 = pnand %p844_p11, %p841_p10 }
  0x3c   :  { %849 = shalt.err (!%p846_p12)
}
  0x3d   :  { %s850_s0 = scalar_lea.vmem %s46_s11, 128  ;;  %p855_p0 = scmp.lt.s32.totalorder %s46_s11, %s46_s11 }
  0x3e   :  { %p851_p13 = scmp.ne.s32.totalorder %s46_s11, %s850_s0  ;;  %p856_p1 = scmp.lt.s32.totalorder %s850_s0, %s850_s0 }
  0x40   :  { %p857_p2 = por %p856_p1, %p855_p0 }
  0x42   :  { %p858_p3 = pnand %p857_p2, %p851_p13 }
  0x44   :  { %861 = shalt.err (!%p858_p3)
}
  0x45   :  { %51 = dma.hbm_to_vmem [thread:$0]  %s1139_s2, 128, %s46_s11, [#allocation7], %s941_s14, %s941_s14, %s942_s17  }
  0x46   :  { %s862_s25 = scalar_lea.hbm %s1142_s5, 1024 }
  0x47   :  { %p863_p4 = scmp.ne.s32.totalorder %s1142_s5, %s862_s25  ;;  %p866_p5 = scmp.lt.u32.totalorder %s862_s25, %s1142_s5 }
  0x49   :  { %p868_p6 = pnand %p866_p5, %p863_p4 }
  0x4b   :  { %871 = shalt.err (!%p868_p6)
}
  0x4c   :  { %s872_s30 = scalar_lea.vmem %s72_s13, 1024  ;;  %p877_p8 = scmp.lt.s32.totalorder %s72_s13, %s72_s13 }
  0x4d   :  { %p873_p7 = scmp.ne.s32.totalorder %s72_s13, %s872_s30  ;;  %p878_p9 = scmp.lt.s32.totalorder %s872_s30, %s872_s30 }
  0x4f   :  { %p879_p10 = por %p878_p9, %p877_p8 }
  0x51   :  { %p880_p11 = pnand %p879_p10, %p873_p7 }
  0x53   :  { %883 = shalt.err (!%p880_p11)
}
  0x54   :  { %77 = dma.hbm_to_vmem [thread:$0]  %s1142_s5, 1024, %s72_s13, [#allocation10], %s941_s14, %s941_s14, %s942_s17  }
  0x55   :  { %s945_s12 = smov [#allocation12]   ;;  %s884_s18 = scalar_lea.hbm %s1145_s8, 2048 }
  0x56   :  { %s87_s15 = sshll.u32 %s945_s12, 4  ;;  %p885_p12 = scmp.ne.s32.totalorder %s1145_s8, %s884_s18  ;;  %s88_s15 = int_to_ptr.vmem [resolvable:$true] %s87_s15 }
  0x57   :  { %p888_p13 = scmp.lt.u32.totalorder %s884_s18, %s1145_s8 }
  0x59   :  { %p890_p0 = pnand %p888_p13, %p885_p12 }
  0x5b   :  { %893 = shalt.err (!%p890_p0)
}
  0x5c   :  { %s894_s28 = scalar_lea.vmem %s88_s15, 2048  ;;  %p899_p2 = scmp.lt.s32.totalorder %s88_s15, %s88_s15 }
  0x5d   :  { %p895_p1 = scmp.ne.s32.totalorder %s88_s15, %s894_s28  ;;  %p900_p3 = scmp.lt.s32.totalorder %s894_s28, %s894_s28 }
  0x5f   :  { %p901_p4 = por %p900_p3, %p899_p2 }
  0x61   :  { %p902_p5 = pnand %p901_p4, %p895_p1 }
  0x63   :  { %905 = shalt.err (!%p902_p5)
}
  0x64   :  { %s946_s5 = smov 128   ;;  %s947_s14 = smov 8  }
  0x65   :  { %93 = dma.hbm_to_vmem [thread:$0]  %s1145_s8, 2048, %s88_s15, [#allocation13], %s946_s5, %s946_s5, %s947_s14  }
  0x66   :  { %928 = dma.done.wait [#allocation4], 128  }
  0x67   :  { %929 = vsyncadd [#allocation4], 4294967168 }
  0x68   :  { %930 = dma.done.wait [#allocation7], 256  }
  0x69   :  { %931 = vsyncadd [#allocation7], 4294967040 }
  0x6a   :  { %932 = dma.done.wait [#allocation10], 2048  }
  0x6b   :  { %933 = vsyncadd [#allocation10], 4294965248 }
  0x6c   :  { %934 = dma.done.wait [#allocation13], 2048  }
  0x6d   :  { %935 = vsyncadd [#allocation13], 4294965248  ;;  %v948_v0 = vmov 0.0   ;;  %vm949_vm0 = vmmov 0   ;;  %v751_v1 = vld [vmem:[#allocation8] sm:$0xff]   ;;  %v120_v2 = vld [vmem:[#allocation3] sm:$0xff] }
  0x6e   :  { %628 = vmatprep.subr.bf16.mxu0 %v948_v0  ;;  %630 = vmatprep.mubr.msk.bf16.mxu0 %vm949_vm0, %v948_v0  ;;  %v121_v3 = vpack.c.bf16 %v120_v2, %v120_v2  ;;  %vm137_vm1 = vcmask 130048   ;;  %v752_v4 = vld [vmem:[#allocation11] sm:$0xff]   ;;  %v753_v5 = vld [vmem:[#allocation11 + $0x8] sm:$0xff]   ;;  %v754_v6 = vld [vmem:[#allocation11 + $0x10] sm:$0xff]   ;;  %v950_v32 = vmov 0.0|0.0  }
  0x6f   :  { %634 = vmatprep.subr.bf16.mxu1 %v948_v0  ;;  %650 = vmatprep.mubr.msk.bf16.mxu1 %vm949_vm0, %v948_v0  ;;  %v755_v7 = vld [vmem:[#allocation11 + $0x18] sm:$0xff]   ;;  %v756_v8 = vld [vmem:[#allocation11 + $0x20] sm:$0xff]   ;;  %v757_v9 = vld [vmem:[#allocation11 + $0x28] sm:$0xff]  }
  0x70   :  { %629 = vmatpush3.bf16.msra.mxu0 %v751_v1  ;;  %635 = vmatpush3.bf16.msra.mxu1 %v752_v4  ;;  %v758_v10 = vld [vmem:[#allocation11 + $0x30] sm:$0xff]   ;;  %v759_v11 = vld [vmem:[#allocation11 + $0x38] sm:$0xff]   ;;  %v571_v12 = vld [vmem:[%s1140_s3] ss:$0 sm:$0xff] }
  0x71   :  { %636 = vmatprep.subr.bf16.mxu1 %v948_v0  ;;  %v760_v17 = vld [vmem:[#allocation9] sm:$0xff]   ;;  %v761_v20 = vld [vmem:[#allocation9 + $0x8] sm:$0xff]   ;;  %v762_v21 = vld [vmem:[#allocation9 + $0x10] sm:$0xff]   ;;  %709 = vmatprep.subr.bf16.mxu0 %v950_v32 }
  0x72   :  { %v763_v22 = vld [vmem:[#allocation9 + $0x18] sm:$0xff]   ;;  %v764_v23 = vld [vmem:[#allocation9 + $0x20] sm:$0xff]   ;;  %v765_v24 = vld [vmem:[#allocation9 + $0x28] sm:$0xff]  }
  0x73   :  { %631 = vmatmul.mubr.msk.bf16.vlgmr.msra.gmra.mrb[0].mxu0 %vm137_vm1, %v121_v3  ;;  %v766_v25 = vld [vmem:[#allocation9 + $0x30] sm:$0xff]   ;;  %v767_v26 = vld [vmem:[#allocation9 + $0x38] sm:$0xff]   ;;  %v446_v29 = vld [vmem:[#allocation12] sm:$0xff] }
  0x74   :  { %706 = vmatprep.mubr.msk.f32.mxu0 %vm949_vm0, %v948_v0  ;;  %637 = vmatpush3.bf16.msra.mxu1 %v753_v5  ;;  %v182_v27 = vld [vmem:[#allocation6] sm:$0xff]  ;;  %v447_v30 = vld [vmem:[#allocation12 + $0x8] sm:$0xff]  ;;  %v449_v34 = vld [vmem:[#allocation12 + $0x18] sm:$0xff] }
  0x75   :  { %638 = vmatprep.subr.bf16.mxu1 %v948_v0  ;;  %v183_v28 = vpack.c.bf16 %v182_v27, %v182_v27  ;;  %v710_v31 = vpack.c.bf16 %v447_v30, %v446_v29  ;;  %v448_v33 = vld [vmem:[#allocation12 + $0x10] sm:$0xff]  ;;  %v450_v36 = vld [vmem:[#allocation12 + $0x20] sm:$0xff]  ;;  %v451_v37 = vld [vmem:[#allocation12 + $0x28] sm:$0xff] }
  0x76   :  { %v713_v35 = vpack.c.bf16 %v449_v34, %v448_v33  ;;  %v716_v38 = vpack.c.bf16 %v451_v37, %v450_v36  ;;  %v452_v39 = vld [vmem:[#allocation12 + $0x30] sm:$0xff]  ;;  %v453_v40 = vld [vmem:[#allocation12 + $0x38] sm:$0xff]  ;;  %v454_v42 = vld [vmem:[#allocation12 + $0x40] sm:$0xff] }
  0x77   :  { %711 = vmatpush3.bf16.msra.mxu0 %v710_v31  ;;  %v719_v41 = vpack.c.bf16 %v453_v40, %v452_v39  ;;  %v455_v43 = vld [vmem:[#allocation12 + $0x48] sm:$0xff]  ;;  %v456_v45 = vld [vmem:[#allocation12 + $0x50] sm:$0xff]  ;;  %v457_v46 = vld [vmem:[#allocation12 + $0x58] sm:$0xff] }
  0x78   :  { %639 = vmatpush3.bf16.msra.mxu1 %v754_v6  ;;  %712 = vmatprep.subr.bf16.mxu0 %v950_v32  ;;  %v722_v44 = vpack.c.bf16 %v455_v43, %v454_v42  ;;  %v725_v47 = vpack.c.bf16 %v457_v46, %v456_v45  ;;  %v458_v48 = vld [vmem:[#allocation12 + $0x60] sm:$0xff]  ;;  %v459_v49 = vld [vmem:[#allocation12 + $0x68] sm:$0xff]  ;;  %v460_v51 = vld [vmem:[#allocation12 + $0x70] sm:$0xff] }
  0x79   :  { %640 = vmatprep.subr.bf16.mxu1 %v948_v0  ;;  %v728_v50 = vpack.c.bf16 %v459_v49, %v458_v48  ;;  %v461_v52 = vld [vmem:[#allocation12 + $0x78] sm:$0xff] }
  0x7a   :  { %v731_v53 = vpack.c.bf16 %v461_v52, %v460_v51 }
  0x7b   :  { %714 = vmatpush3.bf16.msra.mxu0 %v713_v35 }
  0x7c   :  { %641 = vmatpush3.bf16.msra.mxu1 %v755_v7  ;;  %715 = vmatprep.subr.bf16.mxu0 %v950_v32 }
  0x7d   :  { %642 = vmatprep.subr.bf16.mxu1 %v948_v0 }
  0x7f   :  { %717 = vmatpush3.bf16.msra.mxu0 %v716_v38 }
  0x80   :  { %643 = vmatpush3.bf16.msra.mxu1 %v756_v8  ;;  %718 = vmatprep.subr.bf16.mxu0 %v950_v32 }
  0x81   :  { %644 = vmatprep.subr.bf16.mxu1 %v948_v0 }
  0x83   :  { %720 = vmatpush3.bf16.msra.mxu0 %v719_v41 }
  0x84   :  { %645 = vmatpush3.bf16.msra.mxu1 %v757_v9  ;;  %721 = vmatprep.subr.bf16.mxu0 %v950_v32 }
  0x85   :  { %646 = vmatprep.subr.bf16.mxu1 %v948_v0 }
  0x87   :  { %723 = vmatpush3.bf16.msra.mxu0 %v722_v44 }
  0x88   :  { %647 = vmatpush3.bf16.msra.mxu1 %v758_v10  ;;  %724 = vmatprep.subr.bf16.mxu0 %v950_v32 }
  0x89   :  { %648 = vmatprep.subr.bf16.mxu1 %v948_v0 }
  0x8b   :  { %726 = vmatpush3.bf16.msra.mxu0 %v725_v47 }
  0x8c   :  { %649 = vmatpush3.bf16.msra.mxu1 %v759_v11  ;;  %727 = vmatprep.subr.bf16.mxu0 %v950_v32 }
  0x8d   :  { %654 = vmatprep.subr.bf16.mxu1 %v948_v0 }
  0x8f   :  { %729 = vmatpush3.bf16.msra.mxu0 %v728_v50 }
  0x90   :  { %730 = vmatprep.subr.bf16.mxu0 %v950_v32 }
  0x93   :  { %732 = vmatpush3.bf16.msra.mxu0 %v731_v53 }
 0x146   :  { %v175_v13 = vpop.f32.mrb[0].mxu0 }
 0x147   :  { %v176_v14 = vadd.f32 %v571_v12, %v175_v13  ;;  %v632_v15 = vpop.f32.mrb[1].mxu0  ;;  %v430_v12 = vlaneseq }
 0x148   :  { %v178_v16 = vpop.f32.mrb[2].mxu0 }
 0x149   :  { %v200_v18 = vpack.c.bf16 %v176_v14, %v176_v14  ;;  %v633_v19 = vpop.f32.mrb[3].mxu0  ;;  %v431_v13 = vshrl.u32 %v430_v12, 7  ;;  %v422_v14 = vld [vmem:[%s1143_s6] sm:$0x1]  ;;  %v540_v27 = vand.u32 127, %v430_v12 }
 0x14b   :  { %651 = vmatmul.mubr.bf16.vlgmr.msra.gmra.mrb[0].mxu1 %v200_v18  ;;  %v432_v15 = vsub.s32 0, %v431_v13  ;;  %v426_v18 = vld [vmem:[%s1144_s7] sm:$0x1]  ;;  %vm541_vm3 = vcmp.lt.s32.totalorder %v540_v27, 8  ;;  %s951_s7 = smov [#allocation14]  }
 0x14c   :  { %655 = vmatpush3.bf16.msra.mxu1 %v760_v17  ;;  %670 = vmatprep.mubr.msk.bf16.mxu1 %vm949_vm0, %v948_v0  ;;  %s559_s29 = sshll.u32 %s951_s7, 4  ;;  %s560_s29 = int_to_ptr.vmem [resolvable:$true] %s559_s29 }
 0x14d   :  { %656 = vmatprep.subr.bf16.mxu1 %v948_v0  ;;  %p911_p7 = scmp.lt.s32.totalorder %s560_s29, %s560_s29 }
 0x150   :  { %657 = vmatpush3.bf16.msra.mxu1 %v761_v20 }
 0x151   :  { %658 = vmatprep.subr.bf16.mxu1 %v948_v0 }
 0x154   :  { %659 = vmatpush3.bf16.msra.mxu1 %v762_v21 }
 0x155   :  { %660 = vmatprep.subr.bf16.mxu1 %v948_v0 }
 0x158   :  { %661 = vmatpush3.bf16.msra.mxu1 %v763_v22 }
 0x159   :  { %662 = vmatprep.subr.bf16.mxu1 %v948_v0 }
 0x15c   :  { %663 = vmatpush3.bf16.msra.mxu1 %v764_v23 }
 0x15d   :  { %664 = vmatprep.subr.bf16.mxu1 %v948_v0 }
 0x160   :  { %665 = vmatpush3.bf16.msra.mxu1 %v765_v24 }
 0x161   :  { %666 = vmatprep.subr.bf16.mxu1 %v948_v0 }
 0x164   :  { %667 = vmatpush3.bf16.msra.mxu1 %v766_v25 }
 0x165   :  { %668 = vmatprep.subr.bf16.mxu1 %v948_v0 }
 0x168   :  { %669 = vmatpush3.bf16.msra.mxu1 %v767_v26 }
 0x16b   :  { %671 = vmatmul.mubr.bf16.vlgmr.msra.gmra.mrb[0].mxu1 %v183_v28  ;;  %v590_v28 = vld [vmem:[%s1146_s9] ss:$0 sm:$0xff]  ;;  %s906_s9 = scalar_lea.vmem %s560_s29, 128 }
 0x16c   :  { %p907_p6 = scmp.ne.s32.totalorder %s560_s29, %s906_s9  ;;  %p912_p8 = scmp.lt.s32.totalorder %s906_s9, %s906_s9 }
 0x16e   :  { %p913_p9 = por %p912_p8, %p911_p7 }
 0x170   :  { %p914_p10 = pnand %p913_p9, %p907_p6 }
 0x23e   :  { %v387_v54 = vpop.f32.mrb[0].mxu1 }
 0x23f   :  { %v405_v55 = vrot.slane %v387_v54, 4  ;;  %v412_v56 = vmul.f32 %v387_v54, %v387_v54  ;;  %v672_v57 = vpop.f32.mrb[1].mxu1 }
 0x240   :  { %v390_v58 = vpop.f32.mrb[2].mxu1 }
 0x241   :  { %v406_v59 = vadd.f32 %v405_v55, %v387_v54  ;;  %v413_v60 = vrot.slane %v412_v56, 4  ;;  %v673_v61 = vpop.f32.mrb[3].mxu1 }
 0x243   :  { %v407_v62 = vrot.slane %v406_v59, 2  ;;  %v414_v63 = vadd.f32 %v413_v60, %v412_v56 }
 0x245   :  { %v408_v0 = vadd.f32 %v407_v62, %v406_v59  ;;  %v415_v1 = vrot.slane %v414_v63, 2 }
 0x247   :  { %v409_v2 = vrot.slane %v408_v0, 1  ;;  %v416_v3 = vadd.f32 %v415_v1, %v414_v63 }
 0x249   :  { %v410_v4 = vadd.f32 %v409_v2, %v408_v0  ;;  %v417_v5 = vrot.slane %v416_v3, 1 }
 0x24b   :  { %v411_v6 = vmul.f32 0.125, %v410_v4  ;;  %v418_v7 = vadd.f32 %v417_v5, %v416_v3 }
 0x24d   :  { %v419_v8 = vmul.f32 0.125, %v418_v7  ;;  %v420_v9 = vmul.f32 %v411_v6, %v411_v6 }
 0x24f   :  { %v421_v10 = vsub.f32 %v419_v8, %v420_v9 }
 0x251   :  { %v423_v11 = vadd.f32 1e-05, %v421_v10 }
 0x253   :  { %768 = vrsqrt.f32 %v423_v11 }
 0x25d   :  { %v769_v16 = vpop.eup %768 }
 0x25e   :  { %v425_v17 = vmul.f32 %v769_v16, %v422_v14 }
 0x260   :  { %v427_v19 = vmul.f32 %v425_v17, %v411_v6  ;;  %v433_v20 = vrot.slane %v425_v17, %v432_v15 }
 0x262   :  { %v428_v21 = vsub.f32 %v426_v18, %v427_v19  ;;  %v435_v22 = vmul.f32 %v433_v20, %v387_v54 }
 0x264   :  { %v440_v23 = vrot.slane %v428_v21, %v432_v15 }
 0x266   :  { %v442_v24 = vadd.f32 %v440_v23, %v435_v22 }
 0x268   :  { %vm443_vm2 = vcmp.ge.f32.partialorder %v442_v24, 0.0  ;;  %v444_v25 = vmul.f32 0.1, %v442_v24 }
 0x26a   :  { %v445_v26 = vsel %vm443_vm2, %v442_v24, %v444_v25 }
 0x26b   :  { %707 = vmatmul.mubr.f32.vlgmr.msra.gmra.mrb[4].mxu0 %v445_v26 }
 0x33e   :  { %v535_v29 = vpop.f32.mrb[4].mxu0 }
 0x33f   :  { %v536_v30 = vadd.f32 %v590_v28, %v535_v29  ;;  %v708_v31 = vpop.f32.mrb[5].mxu0 }
 0x341   :  { %v542_v32 = vsel %vm541_vm3, %v536_v30, -1e+30 }
 0x342   :  { %543 = vmax.xlane.f32.xlu0 %v542_v32 }
 0x3cf   :  { %v544_v33 = vpop.xlane.xlu0 %543 }
 0x3d0   :  { %v545_v34 = vsub.f32 %v542_v32, %v544_v33 }
 0x3d2   :  { %v546_v35 = vmul.f32 1.442695, %v545_v34 }
 0x3d4   :  { %770 = vpow2.f32 %v546_v35 }
 0x3de   :  { %v771_v36 = vpop.eup %770 }
 0x3df   :  { %548 = vadd.xlane.f32.xlu0 %v771_v36 }
 0x46c   :  { %v549_v37 = vpop.xlane.xlu0 %548 }
 0x46d   :  { %772 = vrcp.f32 %v549_v37 }
 0x477   :  { %v773_v38 = vpop.eup %772 }
 0x478   :  { %v551_v39 = vmul.f32 %v773_v38, %v771_v36 }
 0x47a   :  { %552 = vst [vmem:[#allocation14] sm:$0xff] %v551_v39 }
 0x47b   :  { %917 = shalt.err (!%p914_p10)
}
 0x47c   :  { %s918_s30 = scalar_lea.hbm %s1147_s10, 128 }
 0x47d   :  { %p919_p11 = scmp.ne.s32.totalorder %s1147_s10, %s918_s30  ;;  %p922_p12 = scmp.lt.u32.totalorder %s918_s30, %s1147_s10 }
 0x47f   :  { %p924_p13 = pnand %p922_p12, %p919_p11 }
 0x481   :  { %927 = shalt.err (!%p924_p13)
}
 0x482   :  { %562 = dma.vmem_to_hbm [thread:$0]  %s560_s29, 128, %s1147_s10, [#allocation5]  }
 0x483   :  { %936 = dma.done.wait [#allocation5], 128  }
 0x484   :  { %937 = vsyncadd [#allocation5], 4294967168 }
 0x485   :  { %566 = vsyncpa [#allocation4], 1 }
 0x486   :  { %567 = vsyncpa [#allocation7], 1 }
 0x487   :  { %568 = vsyncpa [#allocation10], 1 }
 0x488   :  { %569 = vsyncpa [#allocation13], 1 }
 0x489   :  { %570 = vsyncpa [#allocation5], 1 }

</bundles_post_ra>
